<compile_context>
chip_gen: v7x
topology: tpu7x:2x2x1
jax: 0.10.0
libtpu: 0.0.40
codegen_flags: <defaults>
</compile_context>

<pallas_src>
from functools import partial

import jax
import jax.numpy as jnp
from jax.experimental import pallas as pl
from jax.experimental.pallas import tpu as pltpu


def _round_up(x, m):
    return ((x + m - 1) // m) * m


def fused_embed_fnn_kernel(x_ref, weff_ref, b1_ref, w2_ref, b2_ref, out_ref, *, seg):
    """Fused (embedding-folded) 2-layer FNN.

    x_ref    : VMEM int32 [TB, 12]   token indices (first 6 word, last 6 POS)
    weff_ref : VMEM [Kp, Hp]         stacked, embedding-folded layer-1 weight;
                                     row j*seg + idx_j holds emb_j[idx_j] @ W1_j
    b1_ref   : VMEM [1, Hp] f32      layer-1 bias (padded)
    w2_ref   : VMEM [Hp, Hp]         layer-2 weight (padded)
    b2_ref   : VMEM [1, Hp] f32      layer-2 bias (padded)
    out_ref  : [TB, Hp] output block
    """
    tb = out_ref.shape[0]
    n_tok = x_ref.shape[1]          # 12
    kp = weff_ref.shape[0]
    cd = weff_ref.dtype             # compute dtype for MXU operands

    # Multi-hot encode the n_tok token ids of every row against the stacked
    # table: mh[r, j*seg + idx[r, j]] = 1.  Pure vectorized VPU compares —
    # no scalar gather loop, no masked partial stores.
    iota_k = jax.lax.broadcasted_iota(jnp.int32, (tb, kp), 1)
    mh = jnp.zeros((tb, kp), jnp.float32)
    for j in range(n_tok):                               # statically unrolled (12)
        col = x_ref[:, j:j + 1] + (j * seg)              # [TB, 1] int32
        mh = mh + (iota_k == col).astype(jnp.float32)

    # Layer 1 (embedding lookup + linear, fused): one lane-dense MXU matmul.
    h = jnp.dot(mh.astype(cd), weff_ref[...], preferred_element_type=jnp.float32)
    h = jnp.tanh(h + b1_ref[...])                        # f32 VPU/EUP

    # Layer 2.
    o = jnp.dot(h.astype(cd), w2_ref[...], preferred_element_type=jnp.float32)
    out_ref[...] = (o + b2_ref[...]).astype(out_ref.dtype)


def full_model_forward(X, params, *, block_b=1024, compute_dtype=jnp.float32):
    """X: [B, 12] int32 (first 6 -> word vocab, last 6 -> pos vocab).
    Returns [B, 2*embed_dim] float32 (same math as the PyTorch forward)."""
    word_emb = params["word_emb"]   # [Vw, E]
    pos_emb = params["pos_emb"]     # [Vp, E]
    w1, b1 = params["w1"], params["b1"]   # [12E, 2E], [1, 2E]
    w2, b2 = params["w2"], params["b2"]   # [2E, 2E],  [1, 2E]

    B, n_tok = X.shape
    n_word = n_tok // 2
    Vw, E = word_emb.shape
    Vp = pos_emb.shape[0]
    H = w2.shape[1]                 # logical output width (= 2E)

    # ---- pad to lane/sublane friendly shapes (math stays exact) ----
    Hp = _round_up(H, 128)                    # 100 -> 128 (lane-dense output)
    seg = _round_up(max(Vw, Vp), 8)           # per-position segment stride
    Kp = _round_up(n_tok * seg, 128)          # stacked table rows (mult. of 128)

    # ---- fold the embedding tables into layer 1 (done once in the wrapper) ----
    # W_eff[j*seg + v, :H] = emb_table_j[v, :] @ W1[j*E:(j+1)*E, :H]
    w1_r = w1.reshape(n_tok, E, H)
    weff_word = jnp.einsum("ve,jeh->jvh", word_emb, w1_r[:n_word])   # [6, Vw, H]
    weff_pos = jnp.einsum("ve,jeh->jvh", pos_emb, w1_r[n_word:])     # [6, Vp, H]
    weff = jnp.zeros((n_tok, seg, Hp), jnp.float32)
    weff = weff.at[:n_word, :Vw, :H].set(weff_word)
    weff = weff.at[n_word:, :Vp, :H].set(weff_pos)
    weff = weff.reshape(n_tok * seg, Hp)
    if Kp > n_tok * seg:
        weff = jnp.concatenate(
            [weff, jnp.zeros((Kp - n_tok * seg, Hp), jnp.float32)], axis=0)
    weff = weff.astype(compute_dtype)

    b1_p = jnp.zeros((1, Hp), jnp.float32).at[:, :H].set(b1)
    w2_p = jnp.zeros((Hp, Hp), jnp.float32).at[:H, :H].set(w2).astype(compute_dtype)
    b2_p = jnp.zeros((1, Hp), jnp.float32).at[:, :H].set(b2)

    # ---- batch tiling (weights stay VMEM resident across grid steps) ----
    Bp = _round_up(B, 8)
    TB = _round_up(min(block_b, Bp), 8)
    if Bp >= 16:
        # ensure >= 2 grid blocks so "parallel" can use both v7x TensorCores
        TB = min(TB, _round_up((Bp + 1) // 2, 8))
    Bp = _round_up(Bp, TB)
    n_blocks = Bp // TB

    X_p = jnp.zeros((Bp, n_tok), jnp.int32).at[:B].set(X.astype(jnp.int32))

    kernel = partial(fused_embed_fnn_kernel, seg=seg)

    grid_spec = pltpu.PrefetchScalarGridSpec(
        num_scalar_prefetch=0,
        grid=(n_blocks,),
        in_specs=[
            pl.BlockSpec((TB, n_tok), lambda i: (i, 0)),   # token ids (per block)
            pl.BlockSpec((Kp, Hp), lambda i: (0, 0)),      # folded layer-1 weight
            pl.BlockSpec((1, Hp), lambda i: (0, 0)),       # b1
            pl.BlockSpec((Hp, Hp), lambda i: (0, 0)),      # w2
            pl.BlockSpec((1, Hp), lambda i: (0, 0)),       # b2
        ],
        out_specs=pl.BlockSpec((TB, Hp), lambda i: (i, 0)),
    )

    out_p = pl.pallas_call(
        kernel,
        out_shape=jax.ShapeDtypeStruct((Bp, Hp), jnp.float32),
        grid_spec=grid_spec,
        compiler_params=pltpu.CompilerParams(
            dimension_semantics=("parallel",)),
    )(X_p, weff, b1_p, w2_p, b2_p)

    return out_p[:B, :H]


def init_params(key, vocab_size, pos_vocab_size, embed_dim=50):
    # Deterministic synthetic init (stands in for GloVe / nn.init defaults).
    k = jax.random.split(key, 6)
    in_dim = 12 * embed_dim
    hid = 2 * embed_dim
    params = {
        "word_emb": jax.random.normal(k[0], (vocab_size, embed_dim), jnp.float32),
        "pos_emb": jax.random.normal(k[1], (pos_vocab_size, embed_dim), jnp.float32),
        "w1": jax.random.normal(k[2], (in_dim, hid), jnp.float32) * (1.0 / jnp.sqrt(in_dim)),
        "b1": jax.random.normal(k[3], (1, hid), jnp.float32) * 0.01,
        "w2": jax.random.normal(k[4], (hid, hid), jnp.float32) * (1.0 / jnp.sqrt(hid)),
        "b2": jax.random.normal(k[5], (1, hid), jnp.float32) * 0.01,
    }
    return params


if __name__ == "__main__":
    key = jax.random.PRNGKey(0)
    kp, kw, kpz = jax.random.split(key, 3)

    vocab_size = 32       # len(vocab)
    pos_vocab_size = 12   # len(pos_vocab)
    embed_dim = 50
    B = 8

    params = init_params(kp, vocab_size, pos_vocab_size, embed_dim)

    X_word = jax.random.randint(kw, (B, 6), 0, vocab_size, dtype=jnp.int32)
    X_pos = jax.random.randint(kpz, (B, 6), 0, pos_vocab_size, dtype=jnp.int32)
    X = jnp.concatenate([X_word, X_pos], axis=1)  # [B, 12]

    out = full_model_forward(X, params)           # f32 path (exact w.r.t. reference)
    jax.block_until_ready(out)

    # Reference check in plain JAX (same math as the PyTorch forward).
    E = embed_dim
    xw = jnp.take(params["word_emb"], X[:, :6], axis=0).reshape(B, -1)
    xp = jnp.take(params["pos_emb"], X[:, 6:], axis=0).reshape(B, -1)
    feat = jnp.concatenate([xw, xp], axis=1)
    ref = jnp.tanh(feat @ params["w1"] + params["b1"]) @ params["w2"] + params["b2"]
    assert out.shape == (B, 2 * E)
    assert jnp.allclose(out, ref, atol=1e-3, rtol=1e-3), \
        float(jnp.max(jnp.abs(out - ref)))

    print("KERNEL_OK")
</pallas_src>

<mosaic_0001>
module attributes {stable_mosaic.version = 11 : i64} {
  func.func @fused_embed_fnn_kernel(%arg0: i32, %arg1: memref<8x12xi32, #tpu.memory_space<vmem>>, %arg2: memref<384x128xf32, #tpu.memory_space<vmem>>, %arg3: memref<1x128xf32, #tpu.memory_space<vmem>>, %arg4: memref<128x128xf32, #tpu.memory_space<vmem>>, %arg5: memref<1x128xf32, #tpu.memory_space<vmem>>, %arg6: memref<8x128xf32, #tpu.memory_space<vmem>>) attributes {dimension_semantics = [#tpu.dimension_semantics<parallel>], iteration_bounds = array<i64: 1>, scalar_prefetch = 0 : i64, scratch_operands = 0 : i64, tpu.core_type = #tpu.core_type<tc>, window_params = [{transform_indices = @transform_0, window_bounds = array<i64: 8, 12>}, {pipeline_mode = #tpu.pipeline_mode<synchronous>, transform_indices = @transform_1, window_bounds = array<i64: 384, 128>}, {pipeline_mode = #tpu.pipeline_mode<synchronous>, transform_indices = @transform_2, window_bounds = array<i64: 1, 128>}, {pipeline_mode = #tpu.pipeline_mode<synchronous>, transform_indices = @transform_3, window_bounds = array<i64: 128, 128>}, {pipeline_mode = #tpu.pipeline_mode<synchronous>, transform_indices = @transform_4, window_bounds = array<i64: 1, 128>}, {transform_indices = @transform_5, window_bounds = array<i64: 8, 128>}]} {
    %0 = tpu.iota {dimensions = array<i32: 1>} : vector<8x384xi32>
    %cst = arith.constant 0.000000e+00 : f32
    %1 = vector.broadcast %cst : f32 to vector<8x384xf32>
    %c0 = arith.constant 0 : index
    %c0_0 = arith.constant 0 : index
    %2 = vector.load %arg1[%c0, %c0_0] : memref<8x12xi32, #tpu.memory_space<vmem>>, vector<8x1xi32>
    %c0_i32 = arith.constant 0 : i32
    %3 = vector.broadcast %c0_i32 : i32 to vector<8x1xi32>
    %4 = arith.addi %2, %3 : vector<8x1xi32>
    %5 = vector.broadcast %4 : vector<8x1xi32> to vector<8x384xi32>
    %6 = arith.cmpi eq, %0, %5 : vector<8x384xi32>
    %7 = arith.extui %6 : vector<8x384xi1> to vector<8x384xi32>
    %8 = arith.sitofp %7 : vector<8x384xi32> to vector<8x384xf32>
    %9 = arith.addf %1, %8 : vector<8x384xf32>
    %c0_1 = arith.constant 0 : index
    %c1 = arith.constant 1 : index
    %10 = vector.load %arg1[%c0_1, %c1] : memref<8x12xi32, #tpu.memory_space<vmem>>, vector<8x1xi32>
    %c32_i32 = arith.constant 32 : i32
    %11 = vector.broadcast %c32_i32 : i32 to vector<8x1xi32>
    %12 = arith.addi %10, %11 : vector<8x1xi32>
    %13 = vector.broadcast %12 : vector<8x1xi32> to vector<8x384xi32>
    %14 = arith.cmpi eq, %0, %13 : vector<8x384xi32>
    %15 = arith.extui %14 : vector<8x384xi1> to vector<8x384xi32>
    %16 = arith.sitofp %15 : vector<8x384xi32> to vector<8x384xf32>
    %17 = arith.addf %9, %16 : vector<8x384xf32>
    %c0_2 = arith.constant 0 : index
    %c2 = arith.constant 2 : index
    %18 = vector.load %arg1[%c0_2, %c2] : memref<8x12xi32, #tpu.memory_space<vmem>>, vector<8x1xi32>
    %c64_i32 = arith.constant 64 : i32
    %19 = vector.broadcast %c64_i32 : i32 to vector<8x1xi32>
    %20 = arith.addi %18, %19 : vector<8x1xi32>
    %21 = vector.broadcast %20 : vector<8x1xi32> to vector<8x384xi32>
    %22 = arith.cmpi eq, %0, %21 : vector<8x384xi32>
    %23 = arith.extui %22 : vector<8x384xi1> to vector<8x384xi32>
    %24 = arith.sitofp %23 : vector<8x384xi32> to vector<8x384xf32>
    %25 = arith.addf %17, %24 : vector<8x384xf32>
    %c0_3 = arith.constant 0 : index
    %c3 = arith.constant 3 : index
    %26 = vector.load %arg1[%c0_3, %c3] : memref<8x12xi32, #tpu.memory_space<vmem>>, vector<8x1xi32>
    %c96_i32 = arith.constant 96 : i32
    %27 = vector.broadcast %c96_i32 : i32 to vector<8x1xi32>
    %28 = arith.addi %26, %27 : vector<8x1xi32>
    %29 = vector.broadcast %28 : vector<8x1xi32> to vector<8x384xi32>
    %30 = arith.cmpi eq, %0, %29 : vector<8x384xi32>
    %31 = arith.extui %30 : vector<8x384xi1> to vector<8x384xi32>
    %32 = arith.sitofp %31 : vector<8x384xi32> to vector<8x384xf32>
    %33 = arith.addf %25, %32 : vector<8x384xf32>
    %c0_4 = arith.constant 0 : index
    %c4 = arith.constant 4 : index
    %34 = vector.load %arg1[%c0_4, %c4] : memref<8x12xi32, #tpu.memory_space<vmem>>, vector<8x1xi32>
    %c128_i32 = arith.constant 128 : i32
    %35 = vector.broadcast %c128_i32 : i32 to vector<8x1xi32>
    %36 = arith.addi %34, %35 : vector<8x1xi32>
    %37 = vector.broadcast %36 : vector<8x1xi32> to vector<8x384xi32>
    %38 = arith.cmpi eq, %0, %37 : vector<8x384xi32>
    %39 = arith.extui %38 : vector<8x384xi1> to vector<8x384xi32>
    %40 = arith.sitofp %39 : vector<8x384xi32> to vector<8x384xf32>
    %41 = arith.addf %33, %40 : vector<8x384xf32>
    %c0_5 = arith.constant 0 : index
    %c5 = arith.constant 5 : index
    %42 = vector.load %arg1[%c0_5, %c5] : memref<8x12xi32, #tpu.memory_space<vmem>>, vector<8x1xi32>
    %c160_i32 = arith.constant 160 : i32
    %43 = vector.broadcast %c160_i32 : i32 to vector<8x1xi32>
    %44 = arith.addi %42, %43 : vector<8x1xi32>
    %45 = vector.broadcast %44 : vector<8x1xi32> to vector<8x384xi32>
    %46 = arith.cmpi eq, %0, %45 : vector<8x384xi32>
    %47 = arith.extui %46 : vector<8x384xi1> to vector<8x384xi32>
    %48 = arith.sitofp %47 : vector<8x384xi32> to vector<8x384xf32>
    %49 = arith.addf %41, %48 : vector<8x384xf32>
    %c0_6 = arith.constant 0 : index
    %c6 = arith.constant 6 : index
    %50 = vector.load %arg1[%c0_6, %c6] : memref<8x12xi32, #tpu.memory_space<vmem>>, vector<8x1xi32>
    %c192_i32 = arith.constant 192 : i32
    %51 = vector.broadcast %c192_i32 : i32 to vector<8x1xi32>
    %52 = arith.addi %50, %51 : vector<8x1xi32>
    %53 = vector.broadcast %52 : vector<8x1xi32> to vector<8x384xi32>
    %54 = arith.cmpi eq, %0, %53 : vector<8x384xi32>
    %55 = arith.extui %54 : vector<8x384xi1> to vector<8x384xi32>
    %56 = arith.sitofp %55 : vector<8x384xi32> to vector<8x384xf32>
    %57 = arith.addf %49, %56 : vector<8x384xf32>
    %c0_7 = arith.constant 0 : index
    %c7 = arith.constant 7 : index
    %58 = vector.load %arg1[%c0_7, %c7] : memref<8x12xi32, #tpu.memory_space<vmem>>, vector<8x1xi32>
    %c224_i32 = arith.constant 224 : i32
    %59 = vector.broadcast %c224_i32 : i32 to vector<8x1xi32>
    %60 = arith.addi %58, %59 : vector<8x1xi32>
    %61 = vector.broadcast %60 : vector<8x1xi32> to vector<8x384xi32>
    %62 = arith.cmpi eq, %0, %61 : vector<8x384xi32>
    %63 = arith.extui %62 : vector<8x384xi1> to vector<8x384xi32>
    %64 = arith.sitofp %63 : vector<8x384xi32> to vector<8x384xf32>
    %65 = arith.addf %57, %64 : vector<8x384xf32>
    %c0_8 = arith.constant 0 : index
    %c8 = arith.constant 8 : index
    %66 = vector.load %arg1[%c0_8, %c8] : memref<8x12xi32, #tpu.memory_space<vmem>>, vector<8x1xi32>
    %c256_i32 = arith.constant 256 : i32
    %67 = vector.broadcast %c256_i32 : i32 to vector<8x1xi32>
    %68 = arith.addi %66, %67 : vector<8x1xi32>
    %69 = vector.broadcast %68 : vector<8x1xi32> to vector<8x384xi32>
    %70 = arith.cmpi eq, %0, %69 : vector<8x384xi32>
    %71 = arith.extui %70 : vector<8x384xi1> to vector<8x384xi32>
    %72 = arith.sitofp %71 : vector<8x384xi32> to vector<8x384xf32>
    %73 = arith.addf %65, %72 : vector<8x384xf32>
    %c0_9 = arith.constant 0 : index
    %c9 = arith.constant 9 : index
    %74 = vector.load %arg1[%c0_9, %c9] : memref<8x12xi32, #tpu.memory_space<vmem>>, vector<8x1xi32>
    %c288_i32 = arith.constant 288 : i32
    %75 = vector.broadcast %c288_i32 : i32 to vector<8x1xi32>
    %76 = arith.addi %74, %75 : vector<8x1xi32>
    %77 = vector.broadcast %76 : vector<8x1xi32> to vector<8x384xi32>
    %78 = arith.cmpi eq, %0, %77 : vector<8x384xi32>
    %79 = arith.extui %78 : vector<8x384xi1> to vector<8x384xi32>
    %80 = arith.sitofp %79 : vector<8x384xi32> to vector<8x384xf32>
    %81 = arith.addf %73, %80 : vector<8x384xf32>
    %c0_10 = arith.constant 0 : index
    %c10 = arith.constant 10 : index
    %82 = vector.load %arg1[%c0_10, %c10] : memref<8x12xi32, #tpu.memory_space<vmem>>, vector<8x1xi32>
    %c320_i32 = arith.constant 320 : i32
    %83 = vector.broadcast %c320_i32 : i32 to vector<8x1xi32>
    %84 = arith.addi %82, %83 : vector<8x1xi32>
    %85 = vector.broadcast %84 : vector<8x1xi32> to vector<8x384xi32>
    %86 = arith.cmpi eq, %0, %85 : vector<8x384xi32>
    %87 = arith.extui %86 : vector<8x384xi1> to vector<8x384xi32>
    %88 = arith.sitofp %87 : vector<8x384xi32> to vector<8x384xf32>
    %89 = arith.addf %81, %88 : vector<8x384xf32>
    %c0_11 = arith.constant 0 : index
    %c11 = arith.constant 11 : index
    %90 = vector.load %arg1[%c0_11, %c11] : memref<8x12xi32, #tpu.memory_space<vmem>>, vector<8x1xi32>
    %c352_i32 = arith.constant 352 : i32
    %91 = vector.broadcast %c352_i32 : i32 to vector<8x1xi32>
    %92 = arith.addi %90, %91 : vector<8x1xi32>
    %93 = vector.broadcast %92 : vector<8x1xi32> to vector<8x384xi32>
    %94 = arith.cmpi eq, %0, %93 : vector<8x384xi32>
    %95 = arith.extui %94 : vector<8x384xi1> to vector<8x384xi32>
    %96 = arith.sitofp %95 : vector<8x384xi32> to vector<8x384xf32>
    %97 = arith.addf %89, %96 : vector<8x384xf32>
    %c0_12 = arith.constant 0 : index
    %c0_13 = arith.constant 0 : index
    %98 = vector.load %arg2[%c0_12, %c0_13] : memref<384x128xf32, #tpu.memory_space<vmem>>, vector<384x128xf32>
    %cst_14 = arith.constant dense<0.000000e+00> : vector<8x128xf32>
    %99 = tpu.matmul %97, %98, %cst_14 {dimension_numbers = #tpu.dot_dimension_numbers<[1], [0], [0], [1], [0, 0, 1, 1], [], []>} : vector<8x384xf32>, vector<384x128xf32>, vector<8x128xf32> -> vector<8x128xf32>
    %c0_15 = arith.constant 0 : index
    %c0_16 = arith.constant 0 : index
    %100 = vector.load %arg3[%c0_15, %c0_16] : memref<1x128xf32, #tpu.memory_space<vmem>>, vector<1x128xf32>
    %101 = vector.broadcast %100 : vector<1x128xf32> to vector<8x128xf32>
    %102 = arith.addf %99, %101 : vector<8x128xf32>
    %103 = math.tanh %102 : vector<8x128xf32>
    %c0_17 = arith.constant 0 : index
    %c0_18 = arith.constant 0 : index
    %104 = vector.load %arg4[%c0_17, %c0_18] : memref<128x128xf32, #tpu.memory_space<vmem>>, vector<128x128xf32>
    %cst_19 = arith.constant dense<0.000000e+00> : vector<8x128xf32>
    %105 = tpu.matmul %103, %104, %cst_19 {dimension_numbers = #tpu.dot_dimension_numbers<[1], [0], [0], [1], [0, 0, 1, 1], [], []>} : vector<8x128xf32>, vector<128x128xf32>, vector<8x128xf32> -> vector<8x128xf32>
    %c0_20 = arith.constant 0 : index
    %c0_21 = arith.constant 0 : index
    %106 = vector.load %arg5[%c0_20, %c0_21] : memref<1x128xf32, #tpu.memory_space<vmem>>, vector<1x128xf32>
    %107 = vector.broadcast %106 : vector<1x128xf32> to vector<8x128xf32>
    %108 = arith.addf %105, %107 : vector<8x128xf32>
    %c0_22 = arith.constant 0 : index
    %c0_23 = arith.constant 0 : index
    %109 = vector.load %arg6[%c0_22, %c0_23] : memref<8x128xf32, #tpu.memory_space<vmem>>, vector<8x128xf32>
    tpu.vector_store %arg6[%c0_22, %c0_23], %108 {strides = array<i32>} : memref<8x128xf32, #tpu.memory_space<vmem>>, vector<8x128xf32>,
    return
  }
  func.func @transform_0(%arg0: i32) -> (i32, i32) {
    %c0_i32 = arith.constant 0 : i32
    %c0_i32_0 = arith.constant 0 : i32
    return %arg0, %c0_i32 : i32, i32
  }
  func.func @transform_1(%arg0: i32) -> (i32, i32) {
    %c0_i32 = arith.constant 0 : i32
    %c0_i32_0 = arith.constant 0 : i32
    %c0_i32_1 = arith.constant 0 : i32
    return %c0_i32, %c0_i32_0 : i32, i32
  }
  func.func @transform_2(%arg0: i32) -> (i32, i32) {
    %c0_i32 = arith.constant 0 : i32
    %c0_i32_0 = arith.constant 0 : i32
    %c0_i32_1 = arith.constant 0 : i32
    return %c0_i32, %c0_i32_0 : i32, i32
  }
  func.func @transform_3(%arg0: i32) -> (i32, i32) {
    %c0_i32 = arith.constant 0 : i32
    %c0_i32_0 = arith.constant 0 : i32
    %c0_i32_1 = arith.constant 0 : i32
    return %c0_i32, %c0_i32_0 : i32, i32
  }
  func.func @transform_4(%arg0: i32) -> (i32, i32) {
    %c0_i32 = arith.constant 0 : i32
    %c0_i32_0 = arith.constant 0 : i32
    %c0_i32_1 = arith.constant 0 : i32
    return %c0_i32, %c0_i32_0 : i32, i32
  }
  func.func @transform_5(%arg0: i32) -> (i32, i32) {
    %c0_i32 = arith.constant 0 : i32
    %c0_i32_0 = arith.constant 0 : i32
    return %arg0, %c0_i32 : i32, i32
  }
}

</mosaic_0001>

<bundles_post_ra>
// kernel: tpu_custom_call.1
= control target key start
LH: loop header
LB: loop body
LE: loop exit
PB: predicated region body
PF: predicated region fallthrough
CT: control target
= control target key end

     0   :  { %10 = vsyncpa [#allocation3], 0  ;;  %s1173_s0 = inlined_call_operand.hbm [shape: s32[8,12], index: 0, kind: input, shape index: {}]   ;;  %s1174_s1 = inlined_call_operand.hbm [shape: f32[384,128], index: 1, kind: input, shape index: {}]   ;;  %s1175_s2 = inlined_call_operand.vmem [shape: f32[1,128], index: 2, kind: input, shape index: {}]   ;;  %s1176_s3 = inlined_call_operand.hbm [shape: f32[128,128], index: 3, kind: input, shape index: {}]   ;;  %s1177_s4 = inlined_call_operand.vmem [shape: f32[1,128], index: 4, kind: input, shape index: {}]   ;;  %s1178_s5 = inlined_call_operand.hbm [shape: f32[8,128], index: 5, kind: output, shape index: {}]  }
   0x1   :  { %11 = vsyncpa [#allocation6], 0 }
   0x2   :  { %12 = vsyncpa [#allocation4], 0  ;;  %s948_s18 = smov [#allocation5]   ;;  %s854_s22 = scalar_lea.hbm %s1174_s1, 6144 }
   0x3   :  { %s28_s19 = sshll.u32 %s948_s18, 4  ;;  %p855_p0 = scmp.ne.s32.totalorder %s1174_s1, %s854_s22  ;;  %s29_s19 = int_to_ptr.vmem [resolvable:$true] %s28_s19 }
   0x4   :  { %p858_p1 = scmp.lt.u32.totalorder %s854_s22, %s1174_s1 }
   0x6   :  { %p860_p2 = pnand %p858_p1, %p855_p0 }
   0x8   :  { %863 = shalt.err (!%p860_p2)
}
   0x9   :  { %s864_s27 = scalar_lea.vmem %s29_s19, 6144  ;;  %p869_p4 = scmp.lt.s32.totalorder %s29_s19, %s29_s19 }
   0xa   :  { %p865_p3 = scmp.ne.s32.totalorder %s29_s19, %s864_s27  ;;  %p870_p5 = scmp.lt.s32.totalorder %s864_s27, %s864_s27 }
   0xc   :  { %p871_p6 = por %p870_p5, %p869_p4 }
   0xe   :  { %p872_p7 = pnand %p871_p6, %p865_p3 }
  0x10   :  { %875 = shalt.err (!%p872_p7)
}
  0x11   :  { %s949_s28 = smov 128   ;;  %s950_s29 = smov 8  }
  0x12   :  { %34 = dma.hbm_to_vmem [thread:$0]  %s1174_s1, 6144, %s29_s19, [#allocation6], %s949_s28, %s949_s28, %s950_s29  }
  0x13   :  { %s951_s7 = smov [#allocation2]   ;;  %s952_s9 = smov [#allocation7]  }
  0x14   :  { %s19_s8 = sshll.u32 %s951_s7, 4  ;;  %s42_s10 = sshll.u32 %s952_s9, 4  ;;  %s20_s8 = int_to_ptr.vmem [resolvable:$true] %s19_s8  ;;  %s43_s10 = int_to_ptr.vmem [resolvable:$true] %s42_s10 }
  0x15   :  { %s876_s13 = scalar_lea.hbm %s1173_s0, 128 }
  0x16   :  { %p877_p8 = scmp.ne.s32.totalorder %s1173_s0, %s876_s13  ;;  %p880_p9 = scmp.lt.u32.totalorder %s876_s13, %s1173_s0 }
  0x18   :  { %p882_p10 = pnand %p880_p9, %p877_p8 }
  0x1a   :  { %885 = shalt.err (!%p882_p10)
}
  0x1b   :  { %s886_s1 = scalar_lea.vmem %s20_s8, 128  ;;  %p891_p12 = scmp.lt.s32.totalorder %s20_s8, %s20_s8 }
  0x1c   :  { %p887_p11 = scmp.ne.s32.totalorder %s20_s8, %s886_s1  ;;  %p892_p13 = scmp.lt.s32.totalorder %s886_s1, %s886_s1 }
  0x1e   :  { %p893_p0 = por %p892_p13, %p891_p12 }
  0x20   :  { %p894_p1 = pnand %p893_p0, %p887_p11 }
  0x22   :  { %897 = shalt.err (!%p894_p1)
}
  0x23   :  { %22 = dma.hbm_to_vmem [thread:$0]  %s1173_s0, 128, %s20_s8, [#allocation3]  }
  0x24   :  { %s898_s22 = scalar_lea.hbm %s1176_s3, 2048 }
  0x25   :  { %p899_p2 = scmp.ne.s32.totalorder %s1176_s3, %s898_s22  ;;  %p902_p3 = scmp.lt.u32.totalorder %s898_s22, %s1176_s3 }
  0x27   :  { %p904_p4 = pnand %p902_p3, %p899_p2 }
  0x29   :  { %907 = shalt.err (!%p904_p4)
}
  0x2a   :  { %s908_s27 = scalar_lea.vmem %s43_s10, 2048  ;;  %p913_p6 = scmp.lt.s32.totalorder %s43_s10, %s43_s10 }
  0x2b   :  { %p909_p5 = scmp.ne.s32.totalorder %s43_s10, %s908_s27  ;;  %p914_p7 = scmp.lt.s32.totalorder %s908_s27, %s908_s27 }
  0x2d   :  { %p915_p8 = por %p914_p7, %p913_p6 }
  0x2f   :  { %p916_p9 = pnand %p915_p8, %p909_p5 }
  0x31   :  { %919 = shalt.err (!%p916_p9)
}
  0x32   :  { %48 = dma.hbm_to_vmem [thread:$0]  %s1176_s3, 2048, %s43_s10, [#allocation6], %s949_s28, %s949_s28, %s950_s29  }
  0x33   :  { %942 = dma.done.wait [#allocation3], 128  }
  0x34   :  { %943 = vsyncadd [#allocation3], 4294967168 }
  0x35   :  { %944 = dma.done.wait [#allocation6], 8192  }
  0x36   :  { %945 = vsyncadd [#allocation6], 4294959104  ;;  %v953_v0 = vmov 0   ;;  %v954_v1 = vmov 2   ;;  %v1041_v2 = vld [vmem:[#allocation2] sm:$0xff]  ;;  %v955_v6 = vmov 1  }
  0x37   :  { %840 = vset.pattern.permute.xlu0 %v953_v0  ;;  %842 = vset.pattern.permute.xlu1 %v954_v1  ;;  %v96_v3 = vadd.s32 64, %v1041_v2  ;;  %v80_v4 = vadd.s32 32, %v1041_v2  ;;  %v112_v5 = vadd.s32 96, %v1041_v2  ;;  %v956_v7 = vmov 3   ;;  %v272_v10 = vld [vmem:[#allocation5 + $0x80] sm:$0xff]  ;;  %v273_v11 = vld [vmem:[#allocation5 + $0x88] sm:$0xff] }
  0x38   :  { %66 = vperm.xlu0 %840, %v1041_v2   ;;  %v144_v8 = vadd.s32 160, %v1041_v2  ;;  %v957_v9 = vmov 0.0|0.0   ;;  %v288_v12 = vld [vmem:[#allocation5 + $0x100] sm:$0xff]  ;;  %v739_v13 = vpack.c.bf16 %v273_v11, %v272_v10  ;;  %v289_v14 = vld [vmem:[#allocation5 + $0x108] sm:$0xff]  ;;  %v128_v17 = vadd.s32 128, %v1041_v2  ;;  %v274_v21 = vld [vmem:[#allocation5 + $0x90] sm:$0xff] }
  0x39   :  { %98 = vperm.xlu1 %842, %v96_v3   ;;  %771 = vmatprep.subr.bf16.mxu1 %v957_v9  ;;  %v256_v15 = vld [vmem:[#allocation5] sm:$0xff]  ;;  %v257_v16 = vld [vmem:[#allocation5 + $0x8] sm:$0xff]  ;;  %v772_v18 = vpack.c.bf16 %v289_v14, %v288_v12  ;;  %v958_v20 = vmov 5   ;;  %v275_v22 = vld [vmem:[#allocation5 + $0x98] sm:$0xff]  ;;  %v959_v24 = vmov 4   ;;  %v192_v25 = vadd.s32 256, %v1041_v2 }
  0x3a   :  { %v741_v19 = vpack.c.bf16 %v257_v16, %v256_v15  ;;  %740 = vmatprep.subr.bf16.mxu0 %v739_v13  ;;  %v290_v23 = vld [vmem:[#allocation5 + $0x110] sm:$0xff]  ;;  %v743_v26 = vpack.c.bf16 %v275_v22, %v274_v21  ;;  %v291_v27 = vld [vmem:[#allocation5 + $0x118] sm:$0xff]  ;;  %v160_v32 = vadd.s32 192, %v1041_v2  ;;  %v960_v33 = vmov 8   ;;  %v276_v34 = vld [vmem:[#allocation5 + $0xa0] sm:$0xff]  ;;  %s968_s7 = smov [#allocation8]  }
  0x3b   :  { %773 = vmatpush3.bf16.msra.mxu1 %v772_v18  ;;  %v258_v28 = vld [vmem:[#allocation5 + $0x10] sm:$0xff]  ;;  %v259_v29 = vld [vmem:[#allocation5 + $0x18] sm:$0xff]  ;;  %v775_v30 = vpack.c.bf16 %v291_v27, %v290_v23  ;;  %v277_v35 = vld [vmem:[#allocation5 + $0xa8] sm:$0xff]  ;;  %v961_v41 = vmov 6   ;;  %v240_v42 = vadd.s32 352, %v1041_v2  ;;  %v176_v45 = vadd.s32 224, %v1041_v2 }
  0x3c   :  { %841 = vset.pattern.permute.xlu0 %v955_v6  ;;  %742 = vmatpush3.bf16.msra.mxu0 %v741_v19  ;;  %v745_v31 = vpack.c.bf16 %v259_v29, %v258_v28  ;;  %v292_v36 = vld [vmem:[#allocation5 + $0x120] sm:$0xff]  ;;  %v747_v37 = vpack.c.bf16 %v277_v35, %v276_v34  ;;  %v293_v38 = vld [vmem:[#allocation5 + $0x128] sm:$0xff]  ;;  %v278_v46 = vld [vmem:[#allocation5 + $0xb0] sm:$0xff]  ;;  %v962_v49 = vmov 11   ;;  %v963_v56 = vmov 7   ;;  %s552_s8 = sshll.u32 %s968_s7, 4  ;;  %s553_s8 = int_to_ptr.vmem [resolvable:$true] %s552_s8 }
  0x3d   :  { %82 = vperm.xlu0 %841, %v80_v4   ;;  %843 = vset.pattern.permute.xlu1 %v956_v7  ;;  %v260_v39 = vld [vmem:[#allocation5 + $0x20] sm:$0xff]  ;;  %v261_v40 = vld [vmem:[#allocation5 + $0x28] sm:$0xff]  ;;  %v778_v43 = vpack.c.bf16 %v293_v38, %v292_v36  ;;  %v279_v47 = vld [vmem:[#allocation5 + $0xb8] sm:$0xff]  ;;  %v208_v60 = vadd.s32 288, %v1041_v2  ;;  %v964_v4 = vmov 9   ;;  %v224_v13 = vadd.s32 320, %v1041_v2  ;;  %p925_p11 = scmp.lt.s32.totalorder %s553_s8, %s553_s8 }
  0x3e   :  { %114 = vperm.xlu1 %843, %v112_v5   ;;  %774 = vmatprep.subr.bf16.mxu1 %v957_v9  ;;  %v749_v44 = vpack.c.bf16 %v261_v40, %v260_v39  ;;  %v294_v48 = vld [vmem:[#allocation5 + $0x130] sm:$0xff]  ;;  %v751_v50 = vpack.c.bf16 %v279_v47, %v278_v46  ;;  %v295_v51 = vld [vmem:[#allocation5 + $0x138] sm:$0xff]  ;;  %v280_v57 = vld [vmem:[#allocation5 + $0xc0] sm:$0xff]  ;;  %v965_v21 = vmov 10   ;;  %vm966_vm0 = vmmov 0   ;;  %s920_s9 = scalar_lea.vmem %s553_s8, 128 }
  0x3f   :  { %744 = vmatprep.subr.bf16.mxu0 %v743_v26  ;;  %776 = vmatpush3.bf16.msra.mxu1 %v775_v30  ;;  %v262_v52 = vld [vmem:[#allocation5 + $0x30] sm:$0xff]  ;;  %v263_v53 = vld [vmem:[#allocation5 + $0x38] sm:$0xff]  ;;  %v781_v54 = vpack.c.bf16 %v295_v51, %v294_v48  ;;  %v281_v58 = vld [vmem:[#allocation5 + $0xc8] sm:$0xff]  ;;  %v967_v34 = vmov 0.0   ;;  %v60_v35 = vlaneseq  ;;  %p921_p10 = scmp.ne.s32.totalorder %s553_s8, %s920_s9  ;;  %p926_p12 = scmp.lt.s32.totalorder %s920_s9, %s920_s9 }
  0x40   :  { %746 = vmatpush3.bf16.msra.mxu0 %v745_v31  ;;  %777 = vmatprep.subr.bf16.mxu1 %v957_v9  ;;  %v753_v55 = vpack.c.bf16 %v263_v53, %v262_v52  ;;  %v296_v59 = vld [vmem:[#allocation5 + $0x140] sm:$0xff]  ;;  %v755_v61 = vpack.c.bf16 %v281_v58, %v280_v57  ;;  %v297_v62 = vld [vmem:[#allocation5 + $0x148] sm:$0xff]  ;;  %v282_v5 = vld [vmem:[#allocation5 + $0xd0] sm:$0xff] }
  0x41   :  { %845 = vset.pattern.permute.xlu0 %v958_v20  ;;  %748 = vmatprep.subr.bf16.mxu0 %v747_v37  ;;  %v264_v63 = vld [vmem:[#allocation5 + $0x40] sm:$0xff]  ;;  %v265_v0 = vld [vmem:[#allocation5 + $0x48] sm:$0xff]  ;;  %v784_v1 = vpack.c.bf16 %v297_v62, %v296_v59  ;;  %v283_v6 = vld [vmem:[#allocation5 + $0xd8] sm:$0xff]  ;;  %v1066_v36 = vand.u32 127, %v60_v35  ;;  %p927_p13 = por %p926_p12, %p925_p11 }
  0x42   :  { %146 = vperm.xlu0 %845, %v144_v8   ;;  %844 = vset.pattern.permute.xlu1 %v959_v24  ;;  %v757_v3 = vpack.c.bf16 %v265_v0, %v264_v63  ;;  %v298_v7 = vld [vmem:[#allocation5 + $0x150] sm:$0xff]  ;;  %v759_v8 = vpack.c.bf16 %v283_v6, %v282_v5  ;;  %v299_v10 = vld [vmem:[#allocation5 + $0x158] sm:$0xff]  ;;  %v284_v16 = vld [vmem:[#allocation5 + $0xe0] sm:$0xff] }
  0x43   :  { %130 = vperm.xlu1 %844, %v128_v17   ;;  %779 = vmatpush3.bf16.msra.mxu1 %v778_v43  ;;  %v266_v11 = vld [vmem:[#allocation5 + $0x50] sm:$0xff]  ;;  %v267_v12 = vld [vmem:[#allocation5 + $0x58] sm:$0xff]  ;;  %v787_v14 = vpack.c.bf16 %v299_v10, %v298_v7  ;;  %v285_v17 = vld [vmem:[#allocation5 + $0xe8] sm:$0xff]  ;;  %v1069_v37 = vadd.s32 128, %v1066_v36  ;;  %v1072_v38 = vadd.s32 256, %v1066_v36  ;;  %p928_p0 = pnand %p927_p13, %p921_p10 }
  0x44   :  { %750 = vmatpush3.bf16.msra.mxu0 %v749_v44  ;;  %780 = vmatprep.subr.bf16.mxu1 %v957_v9  ;;  %v761_v15 = vpack.c.bf16 %v267_v12, %v266_v11  ;;  %v300_v18 = vld [vmem:[#allocation5 + $0x160] sm:$0xff]  ;;  %v763_v19 = vpack.c.bf16 %v285_v17, %v284_v16  ;;  %v301_v20 = vld [vmem:[#allocation5 + $0x168] sm:$0xff]  ;;  %v287_v26 = vld [vmem:[#allocation5 + $0xf8] sm:$0xff] }
  0x45   :  { %752 = vmatprep.subr.bf16.mxu0 %v751_v50  ;;  %v790_v22 = vpack.c.bf16 %v301_v20, %v300_v18  ;;  %v268_v23 = vld [vmem:[#allocation5 + $0x60] sm:$0xff]  ;;  %v269_v24 = vld [vmem:[#allocation5 + $0x68] sm:$0xff]  ;;  %v302_v27 = vld [vmem:[#allocation5 + $0x170] sm:$0xff]  ;;  %701 = vmatprep.mubr.msk.f32.mxu1 %vm966_vm0, %v967_v34 }
  0x46   :  { %848 = vset.pattern.permute.xlu0 %v960_v33  ;;  %v765_v2 = vpack.c.bf16 %v269_v24, %v268_v23  ;;  %v303_v29 = vld [vmem:[#allocation5 + $0x178] sm:$0xff]  ;;  %v270_v30 = vld [vmem:[#allocation5 + $0x70] sm:$0xff] }
  0x47   :  { %194 = vperm.xlu0 %848, %v192_v25   ;;  %846 = vset.pattern.permute.xlu1 %v961_v41  ;;  %v286_v25 = vld [vmem:[#allocation5 + $0xf0] sm:$0xff]  ;;  %v271_v31 = vld [vmem:[#allocation5 + $0x78] sm:$0xff] }
  0x48   :  { %162 = vperm.xlu1 %846, %v160_v32   ;;  %782 = vmatpush3.bf16.msra.mxu1 %v781_v54  ;;  %v767_v28 = vpack.c.bf16 %v287_v26, %v286_v25  ;;  %v793_v32 = vpack.c.bf16 %v303_v29, %v302_v27  ;;  %v769_v33 = vpack.c.bf16 %v271_v31, %v270_v30 }
  0x49   :  { %754 = vmatpush3.bf16.msra.mxu0 %v753_v55  ;;  %783 = vmatprep.subr.bf16.mxu1 %v957_v9 }
  0x4a   :  { %756 = vmatprep.subr.bf16.mxu0 %v755_v61 }
  0x4b   :  { %851 = vset.pattern.permute.xlu0 %v962_v49 }
  0x4c   :  { %242 = vperm.xlu0 %851, %v240_v42   ;;  %847 = vset.pattern.permute.xlu1 %v963_v56 }
  0x4d   :  { %178 = vperm.xlu1 %847, %v176_v45   ;;  %785 = vmatpush3.bf16.msra.mxu1 %v784_v1 }
  0x4e   :  { %758 = vmatpush3.bf16.msra.mxu0 %v757_v3  ;;  %786 = vmatprep.subr.bf16.mxu1 %v957_v9 }
  0x4f   :  { %760 = vmatprep.subr.bf16.mxu0 %v759_v8 }
  0x51   :  { %849 = vset.pattern.permute.xlu1 %v964_v4  ;;  %788 = vmatpush3.bf16.msra.mxu1 %v787_v14 }
  0x52   :  { %210 = vperm.xlu1 %849, %v208_v60   ;;  %762 = vmatpush3.bf16.msra.mxu0 %v761_v15 }
  0x53   :  { %789 = vmatprep.subr.bf16.mxu1 %v957_v9  ;;  %764 = vmatprep.subr.bf16.mxu0 %v763_v19 }
  0x55   :  { %791 = vmatpush3.bf16.msra.mxu1 %v790_v22 }
  0x56   :  { %850 = vset.pattern.permute.xlu1 %v965_v21  ;;  %766 = vmatpush3.bf16.msra.mxu0 %v765_v2 }
  0x57   :  { %226 = vperm.xlu1 %850, %v224_v13   ;;  %792 = vmatprep.subr.bf16.mxu1 %v957_v9 }
  0x58   :  { %768 = vmatprep.subr.bf16.mxu0 %v767_v28 }
  0x59   :  { %794 = vmatpush3.bf16.msra.mxu1 %v793_v32 }
  0x5a   :  { %770 = vmatpush3.bf16.msra.mxu0 %v769_v33 }
  0x5b   :  { %795 = vmatprep.subr.bf16.mxu0 %v957_v9 }
  0xb7   :  { %v67_v39 = vpop.permute.xlu0 %66 }
  0xb8   :  { %vm68_vm1 = vcmp.eq.s32.totalorder %v1066_v36, %v67_v39  ;;  %vm69_vm2 = vcmp.eq.s32.totalorder %v1069_v37, %v67_v39  ;;  %vm70_vm3 = vcmp.eq.s32.totalorder %v1072_v38, %v67_v39  ;;  %v99_v40 = vpop.permute.xlu1 %98 }
  0xb9   :  { %vm100_vm4 = vcmp.eq.s32.totalorder %v1066_v36, %v99_v40  ;;  %v562_v41 = vsel %vm68_vm1, 1.0, %v967_v34  ;;  %v563_v42 = vsel %vm69_vm2, 1.0, %v967_v34  ;;  %v564_v43 = vsel %vm70_vm3, 1.0, %v967_v34 }
  0xba   :  { %vm101_vm5 = vcmp.eq.s32.totalorder %v1069_v37, %v99_v40  ;;  %vm102_vm6 = vcmp.eq.s32.totalorder %v1072_v38, %v99_v40  ;;  %v568_v45 = vsel %vm100_vm4, 1.0, %v967_v34 }
  0xbb   :  { %v569_v53 = vsel %vm101_vm5, 1.0, %v967_v34  ;;  %v570_v54 = vsel %vm102_vm6, 1.0, %v967_v34 }
  0xbc   :  { %v83_v44 = vpop.permute.xlu0 %82 }
  0xbd   :  { %vm84_vm7 = vcmp.eq.s32.totalorder %v1066_v36, %v83_v44  ;;  %vm85_vm8 = vcmp.eq.s32.totalorder %v1069_v37, %v83_v44  ;;  %vm86_vm9 = vcmp.eq.s32.totalorder %v1072_v38, %v83_v44  ;;  %v115_v49 = vpop.permute.xlu1 %114 }
  0xbe   :  { %v565_v46 = vsel %vm84_vm7, 1.0, %v967_v34  ;;  %v566_v47 = vsel %vm85_vm8, 1.0, %v967_v34  ;;  %v567_v48 = vsel %vm86_vm9, 1.0, %v967_v34  ;;  %vm116_vm10 = vcmp.eq.s32.totalorder %v1066_v36, %v115_v49 }
  0xbf   :  { %v93_v50 = vadd.f32 %v565_v46, %v562_v41  ;;  %v94_v51 = vadd.f32 %v566_v47, %v563_v42  ;;  %v95_v52 = vadd.f32 %v567_v48, %v564_v43  ;;  %vm117_vm11 = vcmp.eq.s32.totalorder %v1069_v37, %v115_v49 }
  0xc0   :  { %vm118_vm12 = vcmp.eq.s32.totalorder %v1072_v38, %v115_v49  ;;  %v571_v59 = vsel %vm116_vm10, 1.0, %v967_v34  ;;  %v572_v60 = vsel %vm117_vm11, 1.0, %v967_v34 }
  0xc1   :  { %v109_v55 = vadd.f32 %v568_v45, %v93_v50  ;;  %v110_v56 = vadd.f32 %v569_v53, %v94_v51  ;;  %v111_v57 = vadd.f32 %v570_v54, %v95_v52  ;;  %v147_v58 = vpop.permute.xlu0 %146  ;;  %v573_v61 = vsel %vm118_vm12, 1.0, %v967_v34 }
  0xc2   :  { %vm148_vm13 = vcmp.eq.s32.totalorder %v1066_v36, %v147_v58  ;;  %v131_v1 = vpop.permute.xlu1 %130  ;;  %vm149_vm14 = vcmp.eq.s32.totalorder %v1069_v37, %v147_v58  ;;  %vm150_vm3 = vcmp.eq.s32.totalorder %v1072_v38, %v147_v58 }
  0xc3   :  { %v125_v62 = vadd.f32 %v571_v59, %v109_v55  ;;  %v126_v63 = vadd.f32 %v572_v60, %v110_v56  ;;  %v127_v0 = vadd.f32 %v573_v61, %v111_v57  ;;  %vm132_vm15 = vcmp.eq.s32.totalorder %v1066_v36, %v131_v1  ;;  %v452_v55 = vld [vmem:[#allocation7] sm:$0xff]  ;;  %v453_v56 = vld [vmem:[#allocation7 + $0x8] sm:$0xff] }
  0xc4   :  { %vm133_vm1 = vcmp.eq.s32.totalorder %v1069_v37, %v131_v1  ;;  %vm134_vm2 = vcmp.eq.s32.totalorder %v1072_v38, %v131_v1  ;;  %v574_v3 = vsel %vm132_vm15, 1.0, %v967_v34  ;;  %v577_v6 = vsel %vm148_vm13, 1.0, %v967_v34  ;;  %v457_v1 = vld [vmem:[#allocation7 + $0x28] sm:$0xff] }
  0xc5   :  { %v575_v4 = vsel %vm133_vm1, 1.0, %v967_v34  ;;  %v576_v5 = vsel %vm134_vm2, 1.0, %v967_v34  ;;  %v141_v7 = vadd.f32 %v574_v3, %v125_v62  ;;  %v578_v11 = vsel %vm149_vm14, 1.0, %v967_v34  ;;  %v454_v62 = vld [vmem:[#allocation7 + $0x10] sm:$0xff] }
  0xc6   :  { %v142_v8 = vadd.f32 %v575_v4, %v126_v63  ;;  %v143_v10 = vadd.f32 %v576_v5, %v127_v0  ;;  %v579_v12 = vsel %vm150_vm3, 1.0, %v967_v34  ;;  %v195_v16 = vpop.permute.xlu0 %194  ;;  %v456_v0 = vld [vmem:[#allocation7 + $0x20] sm:$0xff]  ;;  %v458_v4 = vld [vmem:[#allocation7 + $0x30] sm:$0xff]  ;;  %v459_v5 = vld [vmem:[#allocation7 + $0x38] sm:$0xff] }
  0xc7   :  { %v157_v13 = vadd.f32 %v577_v6, %v141_v7  ;;  %v163_v14 = vpop.permute.xlu1 %162  ;;  %vm196_vm7 = vcmp.eq.s32.totalorder %v1066_v36, %v195_v16  ;;  %vm197_vm8 = vcmp.eq.s32.totalorder %v1069_v37, %v195_v16  ;;  %vm198_vm9 = vcmp.eq.s32.totalorder %v1072_v38, %v195_v16  ;;  %v460_v7 = vld [vmem:[#allocation7 + $0x40] sm:$0xff]  ;;  %v466_v16 = vld [vmem:[#allocation7 + $0x70] sm:$0xff] }
  0xc8   :  { %v158_v15 = vadd.f32 %v578_v11, %v142_v8  ;;  %vm164_vm4 = vcmp.eq.s32.totalorder %v1066_v36, %v163_v14  ;;  %vm165_vm5 = vcmp.eq.s32.totalorder %v1069_v37, %v163_v14  ;;  %vm166_vm6 = vcmp.eq.s32.totalorder %v1072_v38, %v163_v14  ;;  %v461_v8 = vld [vmem:[#allocation7 + $0x48] sm:$0xff]  ;;  %v463_v11 = vld [vmem:[#allocation7 + $0x58] sm:$0xff] }
  0xc9   :  { %v159_v17 = vadd.f32 %v579_v12, %v143_v10  ;;  %v580_v18 = vsel %vm164_vm4, 1.0, %v967_v34  ;;  %v581_v19 = vsel %vm165_vm5, 1.0, %v967_v34  ;;  %v582_v20 = vsel %vm166_vm6, 1.0, %v967_v34  ;;  %v462_v10 = vld [vmem:[#allocation7 + $0x50] sm:$0xff]  ;;  %v465_v14 = vld [vmem:[#allocation7 + $0x68] sm:$0xff] }
  0xca   :  { %v173_v21 = vadd.f32 %v580_v18, %v157_v13  ;;  %v174_v22 = vadd.f32 %v581_v19, %v158_v15  ;;  %v586_v27 = vsel %vm196_vm7, 1.0, %v967_v34  ;;  %v588_v32 = vsel %vm198_vm9, 1.0, %v967_v34  ;;  %v464_v13 = vld [vmem:[#allocation7 + $0x60] sm:$0xff] }
  0xcb   :  { %v175_v24 = vadd.f32 %v582_v20, %v159_v17  ;;  %v243_v28 = vpop.permute.xlu0 %242  ;;  %v587_v33 = vsel %vm197_vm8, 1.0, %v967_v34  ;;  %v802_v3 = vpack.c.bf16 %v457_v1, %v456_v0  ;;  %v805_v6 = vpack.c.bf16 %v459_v5, %v458_v4  ;;  %v467_v17 = vld [vmem:[#allocation7 + $0x78] sm:$0xff] }
  0xcc   :  { %v179_v23 = vpop.permute.xlu1 %178  ;;  %vm244_vm13 = vcmp.eq.s32.totalorder %v1066_v36, %v243_v28  ;;  %vm246_vm2 = vcmp.eq.s32.totalorder %v1072_v38, %v243_v28  ;;  %vm245_vm3 = vcmp.eq.s32.totalorder %v1069_v37, %v243_v28  ;;  %v811_v12 = vpack.c.bf16 %v463_v11, %v462_v10 }
  0xcd   :  { %vm180_vm10 = vcmp.eq.s32.totalorder %v1066_v36, %v179_v23  ;;  %vm181_vm11 = vcmp.eq.s32.totalorder %v1069_v37, %v179_v23  ;;  %vm182_vm12 = vcmp.eq.s32.totalorder %v1072_v38, %v179_v23  ;;  %v595_v48 = vsel %vm244_vm13, 1.0, %v967_v34 }
  0xce   :  { %v583_v2 = vsel %vm180_vm10, 1.0, %v967_v34  ;;  %v584_v25 = vsel %vm181_vm11, 1.0, %v967_v34  ;;  %v585_v26 = vsel %vm182_vm12, 1.0, %v967_v34  ;;  %v597_v49 = vsel %vm246_vm2, 1.0, %v967_v34 }
  0xcf   :  { %v189_v29 = vadd.f32 %v583_v2, %v173_v21  ;;  %v190_v30 = vadd.f32 %v584_v25, %v174_v22  ;;  %v191_v31 = vadd.f32 %v585_v26, %v175_v24  ;;  %v596_v54 = vsel %vm245_vm3, 1.0, %v967_v34  ;;  %v598_v22 = vld [vmem:[%s1175_s2] ss:$0 sm:$0xff] }
  0xd0   :  { %v814_v15 = vpack.c.bf16 %v465_v14, %v464_v13  ;;  %v817_v18 = vpack.c.bf16 %v467_v17, %v466_v16 }
  0xd1   :  { %v205_v35 = vadd.f32 %v586_v27, %v189_v29  ;;  %v211_v39 = vpop.permute.xlu1 %210  ;;  %v207_v40 = vadd.f32 %v588_v32, %v191_v31  ;;  %v206_v41 = vadd.f32 %v587_v33, %v190_v30  ;;  %v599_v27 = vld [vmem:[%s1177_s4] ss:$0 sm:$0xff] }
  0xd2   :  { %vm212_vm14 = vcmp.eq.s32.totalorder %v1066_v36, %v211_v39  ;;  %vm213_vm15 = vcmp.eq.s32.totalorder %v1069_v37, %v211_v39  ;;  %vm214_vm1 = vcmp.eq.s32.totalorder %v1072_v38, %v211_v39 }
  0xd3   :  { %v589_v42 = vsel %vm212_vm14, 1.0, %v967_v34  ;;  %v591_v43 = vsel %vm214_vm1, 1.0, %v967_v34  ;;  %v590_v44 = vsel %vm213_vm15, 1.0, %v967_v34 }
  0xd4   :  { %v221_v45 = vadd.f32 %v589_v42, %v205_v35  ;;  %v223_v46 = vadd.f32 %v591_v43, %v207_v40  ;;  %v222_v50 = vadd.f32 %v590_v44, %v206_v41 }
  0xd6   :  { %v227_v47 = vpop.permute.xlu1 %226 }
  0xd7   :  { %vm228_vm4 = vcmp.eq.s32.totalorder %v1066_v36, %v227_v47  ;;  %vm229_vm5 = vcmp.eq.s32.totalorder %v1069_v37, %v227_v47  ;;  %vm230_vm6 = vcmp.eq.s32.totalorder %v1072_v38, %v227_v47  ;;  %v796_v37 = vpack.c.bf16 %v453_v56, %v452_v55  ;;  %v455_v38 = vld [vmem:[#allocation7 + $0x18] sm:$0xff] }
  0xd8   :  { %v592_v51 = vsel %vm228_vm4, 1.0, %v967_v34  ;;  %v593_v52 = vsel %vm229_vm5, 1.0, %v967_v34  ;;  %v594_v53 = vsel %vm230_vm6, 1.0, %v967_v34  ;;  %v799_v63 = vpack.c.bf16 %v455_v38, %v454_v62 }
  0xd9   :  { %v237_v57 = vadd.f32 %v592_v51, %v221_v45  ;;  %v239_v58 = vadd.f32 %v594_v53, %v223_v46  ;;  %v238_v59 = vadd.f32 %v593_v52, %v222_v50 }
  0xdb   :  { %v253_v60 = vadd.f32 %v595_v48, %v237_v57  ;;  %v255_v36 = vadd.f32 %v597_v49, %v239_v58  ;;  %v254_v61 = vadd.f32 %v596_v54, %v238_v59 }
  0xdd   :  { %375 = vmatprep.mubr.f32.mxu0 %v254_v61  ;;  %702 = vmatmul.mubr.f32.vlgmr.msra.gmra.mrb[0].mxu1 %v255_v36 }
  0xde   :  { %376 = vmatmul.mubr.f32.vlgmr.msra.gmra.mrb[0].mxu0 %v253_v60 }
  0xdf   :  { %797 = vmatpush3.bf16.msra.mxu0 %v796_v37  ;;  %736 = vmatprep.mubr.msk.f32.mxu0 %vm966_vm0, %v967_v34  ;;  %v808_v34 = vpack.c.bf16 %v461_v8, %v460_v7 }
  0xe0   :  { %798 = vmatprep.subr.bf16.mxu0 %v957_v9 }
  0xe3   :  { %800 = vmatpush3.bf16.msra.mxu0 %v799_v63 }
  0xe4   :  { %801 = vmatprep.subr.bf16.mxu0 %v957_v9 }
  0xe7   :  { %803 = vmatpush3.bf16.msra.mxu0 %v802_v3 }
  0xe8   :  { %804 = vmatprep.subr.bf16.mxu0 %v957_v9 }
  0xeb   :  { %806 = vmatpush3.bf16.msra.mxu0 %v805_v6 }
  0xec   :  { %807 = vmatprep.subr.bf16.mxu0 %v957_v9 }
  0xef   :  { %809 = vmatpush3.bf16.msra.mxu0 %v808_v34 }
  0xf0   :  { %810 = vmatprep.subr.bf16.mxu0 %v957_v9 }
  0xf3   :  { %812 = vmatpush3.bf16.msra.mxu0 %v811_v12 }
  0xf4   :  { %813 = vmatprep.subr.bf16.mxu0 %v957_v9 }
  0xf7   :  { %815 = vmatpush3.bf16.msra.mxu0 %v814_v15 }
  0xf8   :  { %816 = vmatprep.subr.bf16.mxu0 %v957_v9 }
  0xfb   :  { %818 = vmatpush3.bf16.msra.mxu0 %v817_v18 }
 0x1b0   :  { %v447_v19 = vpop.f32.mrb[0].mxu1 }
 0x1b1   :  { %v632_v20 = vpop.f32.mrb[0].mxu0  ;;  %v703_v21 = vpop.f32.mrb[1].mxu1 }
 0x1b2   :  { %v633_v23 = vpop.f32.mrb[1].mxu0 }
 0x1b3   :  { %v634_v24 = vadd.f32 %v633_v23, %v632_v20 }
 0x1b5   :  { %v378_v2 = vadd.f32 %v634_v24, %v598_v22 }
 0x1b7   :  { %v448_v25 = vadd.f32 %v447_v19, %v378_v2 }
 0x1b9   :  { %852 = vtanh.f32 %v448_v25 }
 0x1c3   :  { %v853_v26 = vpop.eup %852 }
 0x1c4   :  { %737 = vmatmul.mubr.f32.vlgmr.msra.gmra.mrb[2].mxu0 %v853_v26 }
 0x297   :  { %v541_v9 = vpop.f32.mrb[2].mxu0 }
 0x298   :  { %v542_v28 = vadd.f32 %v599_v27, %v541_v9  ;;  %v738_v29 = vpop.f32.mrb[3].mxu0 }
 0x29a   :  { %545 = vst [vmem:[#allocation8] sm:$0xff] %v542_v28 }
 0x29b   :  { %931 = shalt.err (!%p928_p0)
}
 0x29c   :  { %s932_s11 = scalar_lea.hbm %s1178_s5, 128 }
 0x29d   :  { %p933_p1 = scmp.ne.s32.totalorder %s1178_s5, %s932_s11  ;;  %p936_p2 = scmp.lt.u32.totalorder %s932_s11, %s1178_s5 }
 0x29f   :  { %p938_p3 = pnand %p936_p2, %p933_p1 }
 0x2a1   :  { %941 = shalt.err (!%p938_p3)
}
 0x2a2   :  { %555 = dma.vmem_to_hbm [thread:$0]  %s553_s8, 128, %s1178_s5, [#allocation4]  }
 0x2a3   :  { %946 = dma.done.wait [#allocation4], 128  }
 0x2a4   :  { %947 = vsyncadd [#allocation4], 4294967168 }
 0x2a5   :  { %559 = vsyncpa [#allocation3], 1 }
 0x2a6   :  { %560 = vsyncpa [#allocation6], 1 }
 0x2a7   :  { %561 = vsyncpa [#allocation4], 1 }

</bundles_post_ra>
